<compile_context>
chip_gen: v6e
topology: v6e:2x2x1
jax: 0.10.0
libtpu: 0.0.40
codegen_flags: <defaults>
</compile_context>

<pallas_src>
import jax
import jax.numpy as jnp
from jax.experimental import pallas as pl
from jax.experimental.pallas import tpu as pltpu

NUM_CLASSES = 3
LANES = 128
SUBLANES = 8
MAX_BLOCK_ROWS = 1024   # (1024, 128) int32 = 512 KiB per input block; x2 inputs x2 bufs = 2 MiB
NUM_SPLITS = 2          # megacore parallelism on v7x; harmless serial split elsewhere
ACC_ROWS = 2 * NUM_CLASSES  # row 2c = intersection count, row 2c+1 = union count


def _iou_kernel(p_ref, l_ref, out_ref):
    # p_ref, l_ref : (BLOCK_ROWS, 128) int32 class ids (-1 padding)
    # out_ref      : (1, ACC_ROWS, 128) float32 per-lane partial counts,
    #                resident across the inner ("arbitrary") grid axis.
    i = pl.program_id(1)

    @pl.when(i == 0)
    def _init():
        out_ref[...] = jnp.zeros_like(out_ref)

    p = p_ref[...]
    l = l_ref[...]

    rows = []
    for c in range(NUM_CLASSES):
        pc = p == c
        lc = l == c
        inter = jnp.logical_and(pc, lc)
        union = jnp.logical_or(pc, lc)
        inter_cnt = jnp.sum(inter.astype(jnp.float32), axis=0, keepdims=True)
        union_cnt = jnp.sum(union.astype(jnp.float32), axis=0, keepdims=True)
        rows.append(inter_cnt)   # row 2c
        rows.append(union_cnt)   # row 2c + 1
    upd = jnp.concatenate(rows, axis=0)  # (ACC_ROWS, 128)
    out_ref[0] += upd


def iou_pallas(preds, labels, smooth=1e-6):
    """Mean IoU over 3 classes, matching the PyTorch IOU module semantics."""
    p = preds.reshape(-1).astype(jnp.int32)
    l = labels.reshape(-1).astype(jnp.int32)  # labels.long() equivalent
    n = p.shape[0]

    rows = -(-n // LANES)
    block_rows = min(MAX_BLOCK_ROWS, ((rows + SUBLANES - 1) // SUBLANES) * SUBLANES)
    chunk = block_rows * NUM_SPLITS
    padded_rows = ((rows + chunk - 1) // chunk) * chunk
    pad = padded_rows * LANES - n

    # Pad with -1: never equals a class index, contributes 0 to inter and union.
    p = jnp.pad(p, (0, pad), constant_values=-1).reshape(padded_rows, LANES)
    l = jnp.pad(l, (0, pad), constant_values=-1).reshape(padded_rows, LANES)

    steps = padded_rows // chunk

    in_map = lambda s, i, steps=steps: (s * steps + i, 0)

    partials = pl.pallas_call(
        _iou_kernel,
        out_shape=jax.ShapeDtypeStruct((NUM_SPLITS, ACC_ROWS, LANES), jnp.float32),
        grid_spec=pltpu.PrefetchScalarGridSpec(
            num_scalar_prefetch=0,
            grid=(NUM_SPLITS, steps),
            in_specs=[
                pl.BlockSpec((block_rows, LANES), in_map),
                pl.BlockSpec((block_rows, LANES), in_map),
            ],
            out_specs=pl.BlockSpec((1, ACC_ROWS, LANES), lambda s, i: (s, 0, 0)),
        ),
        compiler_params=pltpu.CompilerParams(
            dimension_semantics=("parallel", "arbitrary"),
        ),
    )(p, l)

    # Tiny epilogue: combine per-split, per-lane partials into the scalar mIoU.
    acc = partials.sum(axis=(0, 2))           # (ACC_ROWS,)
    inter = acc[0::2]                          # (3,) intersection counts
    union = acc[1::2]                          # (3,) union counts
    smooth = jnp.float32(smooth)
    return jnp.mean((inter + smooth) / (union + smooth))


def _iou_reference(preds, labels, smooth=1e-6):
    """Plain-JAX reference mirroring the PyTorch forward."""
    labels = labels.astype(jnp.int32)
    ious = []
    for c in range(NUM_CLASSES):
        pred_c = preds == c
        label_c = labels == c
        inter = jnp.sum(jnp.logical_and(pred_c, label_c)).astype(jnp.float32)
        union = jnp.sum(jnp.logical_or(pred_c, label_c)).astype(jnp.float32)
        ious.append((inter + smooth) / (union + smooth))
    return jnp.mean(jnp.stack(ious))


if __name__ == "__main__":
    key = jax.random.PRNGKey(0)
    k1, k2 = jax.random.split(key)
    # Small segmentation-style inputs: per-pixel class indices in {0, 1, 2}.
    preds = jax.random.randint(k1, (2, 16, 16), 0, NUM_CLASSES, dtype=jnp.int32)
    labels = jax.random.randint(k2, (2, 16, 16), 0, NUM_CLASSES, dtype=jnp.int32)

    miou = iou_pallas(preds, labels)
    jax.block_until_ready(miou)

    ref = _iou_reference(preds, labels)
    assert jnp.allclose(miou, ref, atol=1e-6, rtol=1e-6), (miou, ref)
    print("KERNEL_OK")
</pallas_src>

<mosaic_0001>
module attributes {stable_mosaic.version = 11 : i64} {
  func.func @_iou_kernel(%arg0: i32, %arg1: i32, %arg2: memref<8x128xi32, #tpu.memory_space<vmem>>, %arg3: memref<8x128xi32, #tpu.memory_space<vmem>>, %arg4: memref<1x6x128xf32, #tpu.memory_space<vmem>>) attributes {dimension_semantics = [#tpu.dimension_semantics<parallel>, #tpu.dimension_semantics<arbitrary>], iteration_bounds = array<i64: 2, 1>, scalar_prefetch = 0 : i64, scratch_operands = 0 : i64, tpu.core_type = #tpu.core_type<tc>, window_params = [{transform_indices = @transform_0, window_bounds = array<i64: 8, 128>}, {transform_indices = @transform_1, window_bounds = array<i64: 8, 128>}, {transform_indices = @transform_2, window_bounds = array<i64: 1, 6, 128>}]} {
    %c0_i32 = arith.constant 0 : i32
    %0 = arith.cmpi eq, %arg1, %c0_i32 : i32
    %1 = arith.extui %0 : i1 to i32
    %c0_i32_0 = arith.constant 0 : i32
    %2 = arith.cmpi ne, %1, %c0_i32_0 : i32
    scf.if %2 {
      %cst_19 = arith.constant 0.000000e+00 : f32
      %54 = vector.broadcast %cst_19 : f32 to vector<1x6x128xf32>
      %c0_20 = arith.constant 0 : index
      %c0_21 = arith.constant 0 : index
      %c0_22 = arith.constant 0 : index
      %55 = vector.load %arg4[%c0_20, %c0_21, %c0_22] : memref<1x6x128xf32, #tpu.memory_space<vmem>>, vector<1x6x128xf32>
      tpu.vector_store %arg4[%c0_20, %c0_21, %c0_22], %54 {strides = array<i32>} : memref<1x6x128xf32, #tpu.memory_space<vmem>>, vector<1x6x128xf32>,
    } else {
    }
    %c0 = arith.constant 0 : index
    %c0_1 = arith.constant 0 : index
    %3 = vector.load %arg2[%c0, %c0_1] : memref<8x128xi32, #tpu.memory_space<vmem>>, vector<8x128xi32>
    %c0_2 = arith.constant 0 : index
    %c0_3 = arith.constant 0 : index
    %4 = vector.load %arg3[%c0_2, %c0_3] : memref<8x128xi32, #tpu.memory_space<vmem>>, vector<8x128xi32>
    %c0_i32_4 = arith.constant 0 : i32
    %5 = vector.broadcast %c0_i32_4 : i32 to vector<8x128xi32>
    %6 = arith.cmpi eq, %3, %5 : vector<8x128xi32>
    %c0_i32_5 = arith.constant 0 : i32
    %7 = vector.broadcast %c0_i32_5 : i32 to vector<8x128xi32>
    %8 = arith.cmpi eq, %4, %7 : vector<8x128xi32>
    %9 = arith.andi %6, %8 : vector<8x128xi1>
    %10 = arith.ori %6, %8 : vector<8x128xi1>
    %11 = arith.extui %9 : vector<8x128xi1> to vector<8x128xi32>
    %12 = arith.sitofp %11 : vector<8x128xi32> to vector<8x128xf32>
    %cst = arith.constant dense<0.000000e+00> : vector<128xf32>
    %13 = vector.multi_reduction <add>, %12, %cst [0] : vector<8x128xf32> to vector<128xf32>
    %14 = vector.shape_cast %13 : vector<128xf32> to vector<1x128xf32>
    %15 = arith.extui %10 : vector<8x128xi1> to vector<8x128xi32>
    %16 = arith.sitofp %15 : vector<8x128xi32> to vector<8x128xf32>
    %cst_6 = arith.constant dense<0.000000e+00> : vector<128xf32>
    %17 = vector.multi_reduction <add>, %16, %cst_6 [0] : vector<8x128xf32> to vector<128xf32>
    %18 = vector.shape_cast %17 : vector<128xf32> to vector<1x128xf32>
    %c1_i32 = arith.constant 1 : i32
    %19 = vector.broadcast %c1_i32 : i32 to vector<8x128xi32>
    %20 = arith.cmpi eq, %3, %19 : vector<8x128xi32>
    %c1_i32_7 = arith.constant 1 : i32
    %21 = vector.broadcast %c1_i32_7 : i32 to vector<8x128xi32>
    %22 = arith.cmpi eq, %4, %21 : vector<8x128xi32>
    %23 = arith.andi %20, %22 : vector<8x128xi1>
    %24 = arith.ori %20, %22 : vector<8x128xi1>
    %25 = arith.extui %23 : vector<8x128xi1> to vector<8x128xi32>
    %26 = arith.sitofp %25 : vector<8x128xi32> to vector<8x128xf32>
    %cst_8 = arith.constant dense<0.000000e+00> : vector<128xf32>
    %27 = vector.multi_reduction <add>, %26, %cst_8 [0] : vector<8x128xf32> to vector<128xf32>
    %28 = vector.shape_cast %27 : vector<128xf32> to vector<1x128xf32>
    %29 = arith.extui %24 : vector<8x128xi1> to vector<8x128xi32>
    %30 = arith.sitofp %29 : vector<8x128xi32> to vector<8x128xf32>
    %cst_9 = arith.constant dense<0.000000e+00> : vector<128xf32>
    %31 = vector.multi_reduction <add>, %30, %cst_9 [0] : vector<8x128xf32> to vector<128xf32>
    %32 = vector.shape_cast %31 : vector<128xf32> to vector<1x128xf32>
    %c2_i32 = arith.constant 2 : i32
    %33 = vector.broadcast %c2_i32 : i32 to vector<8x128xi32>
    %34 = arith.cmpi eq, %3, %33 : vector<8x128xi32>
    %c2_i32_10 = arith.constant 2 : i32
    %35 = vector.broadcast %c2_i32_10 : i32 to vector<8x128xi32>
    %36 = arith.cmpi eq, %4, %35 : vector<8x128xi32>
    %37 = arith.andi %34, %36 : vector<8x128xi1>
    %38 = arith.ori %34, %36 : vector<8x128xi1>
    %39 = arith.extui %37 : vector<8x128xi1> to vector<8x128xi32>
    %40 = arith.sitofp %39 : vector<8x128xi32> to vector<8x128xf32>
    %cst_11 = arith.constant dense<0.000000e+00> : vector<128xf32>
    %41 = vector.multi_reduction <add>, %40, %cst_11 [0] : vector<8x128xf32> to vector<128xf32>
    %42 = vector.shape_cast %41 : vector<128xf32> to vector<1x128xf32>
    %43 = arith.extui %38 : vector<8x128xi1> to vector<8x128xi32>
    %44 = arith.sitofp %43 : vector<8x128xi32> to vector<8x128xf32>
    %cst_12 = arith.constant dense<0.000000e+00> : vector<128xf32>
    %45 = vector.multi_reduction <add>, %44, %cst_12 [0] : vector<8x128xf32> to vector<128xf32>
    %46 = vector.shape_cast %45 : vector<128xf32> to vector<1x128xf32>
    %47 = tpu.concatenate %14, %18, %28, %32, %42, %46 in 0 : vector<1x128xf32>, vector<1x128xf32>, vector<1x128xf32>, vector<1x128xf32>, vector<1x128xf32>, vector<1x128xf32> -> vector<6x128xf32>
    %c0_13 = arith.constant 0 : index
    %c0_14 = arith.constant 0 : index
    %c0_15 = arith.constant 0 : index
    %48 = vector.load %arg4[%c0_13, %c0_14, %c0_15] : memref<1x6x128xf32, #tpu.memory_space<vmem>>, vector<1x6x128xf32>
    %49 = vector.shape_cast %48 : vector<1x6x128xf32> to vector<6x128xf32>
    %50 = arith.addf %49, %47 : vector<6x128xf32>
    %c0_16 = arith.constant 0 : index
    %c0_17 = arith.constant 0 : index
    %c0_18 = arith.constant 0 : index
    %51 = vector.load %arg4[%c0_16, %c0_17, %c0_18] : memref<1x6x128xf32, #tpu.memory_space<vmem>>, vector<1x6x128xf32>
    %52 = vector.shape_cast %51 : vector<1x6x128xf32> to vector<6x128xf32>
    %53 = vector.shape_cast %50 : vector<6x128xf32> to vector<1x6x128xf32>
    tpu.vector_store %arg4[%c0_16, %c0_17, %c0_18], %53 {strides = array<i32>} : memref<1x6x128xf32, #tpu.memory_space<vmem>>, vector<1x6x128xf32>,
    return
  }
  func.func @transform_0(%arg0: i32, %arg1: i32) -> (i32, i32) {
    %c1_i32 = arith.constant 1 : i32
    %0 = arith.muli %arg0, %c1_i32 : i32
    %1 = arith.addi %0, %arg1 : i32
    %c0_i32 = arith.constant 0 : i32
    %c0_i32_0 = arith.constant 0 : i32
    return %1, %c0_i32 : i32, i32
  }
  func.func @transform_1(%arg0: i32, %arg1: i32) -> (i32, i32) {
    %c1_i32 = arith.constant 1 : i32
    %0 = arith.muli %arg0, %c1_i32 : i32
    %1 = arith.addi %0, %arg1 : i32
    %c0_i32 = arith.constant 0 : i32
    %c0_i32_0 = arith.constant 0 : i32
    return %1, %c0_i32 : i32, i32
  }
  func.func @transform_2(%arg0: i32, %arg1: i32) -> (i32, i32, i32) {
    %c0_i32 = arith.constant 0 : i32
    %c0_i32_0 = arith.constant 0 : i32
    %c0_i32_1 = arith.constant 0 : i32
    return %arg0, %c0_i32, %c0_i32_0 : i32, i32, i32
  }
}

</mosaic_0001>

<bundles_post_ra>
// kernel: tpu_custom_call.1
= control target key start
LH: loop header
LB: loop body
LE: loop exit
PB: predicated region body
PF: predicated region fallthrough
CT: control target
= control target key end

     0   :  { %7 = vsyncpa [#allocation3], 0  ;;  %s736_s0 = inlined_call_operand.hbm [shape: s32[16,128], index: 0, kind: input, shape index: {}]   ;;  %s737_s1 = inlined_call_operand.hbm [shape: s32[16,128], index: 1, kind: input, shape index: {}]   ;;  %s738_s2 = inlined_call_operand.vmem [shape: f32[2,6,128], index: 2, kind: output, shape index: {}]  }
   0x1   :  { %9 = vsyncpa [#allocation3 + $0x1], 0 }
   0x2   :  { %10 = vsyncpa [#allocation5], 0 }
   0x3   :  { %12 = vsyncpa [#allocation5 + $0x1], 0  ;;  %s605_s9 = smov 0   ;;  %s607_s10 = smov 0  }
   0x4   :  { %s609_s11 = smov 0   ;;  %s611_s12 = smov 0  }
   0x5   :  { %s613_s13 = smov 0   ;;  %s615_s14 = smov 0  }
   0x6 LB: > { %s394_s15 = sadd.s32 4294967295, %s585_s14   ;;  %s30_s16 = sadd.s32 1, %s581_s13  ;;  %s585_s14 = sphi %s615_s14, %s18_s14   ;;  %s581_s13 = sphi %s613_s13, %s747_s13   ;;  %s577_s12 = sphi %s611_s12, %s746_s12   ;;  %s573_s11 = sphi %s609_s11, %s745_s11   ;;  %s569_s10 = sphi %s607_s10, %s744_s10   ;;  %s565_s9 = sphi %s605_s9, %s743_s9  }
   0x7   : > { %p32_p0 = scmp.ge.s32.totalorder %s30_s16, 2  ;;  %s39_s17 = sadd.s32 1, %s573_s11 }
   0x8   : > { %p46_p1 = scmp.ne.s32.totalorder %s573_s11, %s569_s10  ;;  %p47_p2 = scmp.eq.s32.totalorder %s585_s14, 0 }
   0x9   : > { %s749_s16 = smov (%p32_p0, %s30_s16), 0  ;;  %p52_p4 = scmp.ne.s32.totalorder %s569_s10, %s565_s9 }
   0xa   : > { %p641_p3 = por %p47_p2, %p46_p1  ;;  %s36_s19 = ssub.s32 %s581_s13, %s749_s16 }
   0xb   : > { %p53_p5 = scmp.eq.s32.totalorder %s394_s15, 0  ;;  %p37_p6 = scmp.eq.s32.totalorder %s36_s19, 0 }
   0xc   : > { %p425_p8 = scmp.lt.s32.totalorder %s585_s14, 2  ;;  %s657_s22 = sand.u32 1, %s573_s11  }
   0xd   : > { %p648_p7 = por %p53_p5, %p52_p4  ;;  %s399_s23 = sshll.u32 %s581_s13, 7 }
   0xe   : > { %s654_s21 = scalar_select %p37_p6, %s573_s11, %s39_s17  }
   0xf   : > { %s398_s24 = sshll.u32 %s657_s22, 3  ;;  %s140_s27 = scalar_lea.hbm %s736_s0, %s399_s23 }
  0x10   : > { %s134_s28 = scalar_lea.vmem [#allocation2], %s398_s24  ;;  %p666_p9 = pnand %p425_p8, %p641_p3 }
  0x11   : > { %s142_s29 = sshll.u32 %s134_s28, 4  ;;  %p402_p10 = scmp.ge.s32.totalorder %s585_s14, 1  ;;  %s143_s29 = int_to_ptr.vmem [resolvable:$true] %s142_s29 }
  0x12   : > { %p166_p11 = scmp.lt.s32.totalorder %s585_s14, 3  ;;  %s131_s3 = scalar_lea.sflag [#allocation3], %s657_s22 }
  0x13   : > { %p477_p12 = pneg %p666_p9  ;;  %s488_s4 = scalar_lea.vmem %s143_s29, 128 }
  0x14   : > { %p489_p13 = scmp.ne.s32.totalorder %s143_s29, %s488_s4  ;;  %s587_s5 = smov [#allocation2]  }
  0x15   : > { %s493_s6 = sshll.u32 %s587_s5, 4  ;;  %s494_s6 = int_to_ptr.vmem [resolvable:$false] %s493_s6 }
  0x16   : > { %p491_p0 = pnand %p489_p13, %p477_p12  ;;  %s495_s7 = scalar_lea.vmem %s494_s6, 256 }
  0x17   : > { %p496_p2 = scmp.lt.s32.totalorder %s143_s29, %s494_s6  ;;  %p497_p3 = scmp.lt.s32.totalorder %s495_s7, %s488_s4 }
  0x18   : > { %p492_p1 = pneg %p491_p0 }
  0x19   : > { %p498_p4 = por %p497_p3, %p496_p2 }
  0x1b   : > { %p499_p5 = pnand %p498_p4, %p492_p1 }
  0x1d   : > { %502 = shalt.err (!%p499_p5)
}
  0x1e   : > { %421 = dma.hbm_to_vmem [thread:$0]  (!%p666_p9), %s140_s27, 128, %s143_s29, %s131_s3  }
  0x1f   : > { %p684_p6 = pnand %p402_p10, %p166_p11  ;;  %s159_s17 = scalar_lea.hbm %s737_s1, %s399_s23 }
  0x20   : > { %s153_s18 = scalar_lea.vmem [#allocation4], %s398_s24  ;;  %s150_s25 = scalar_lea.sflag [#allocation5], %s657_s22 }
  0x21   : > { %s161_s19 = sshll.u32 %s153_s18, 4  ;;  %s588_s27 = smov [#allocation4]   ;;  %s162_s19 = int_to_ptr.vmem [resolvable:$true] %s161_s19 }
  0x22   : > { %s516_s26 = scalar_lea.vmem %s162_s19, 128  ;;  %s521_s28 = sshll.u32 %s588_s27, 4  ;;  %s522_s28 = int_to_ptr.vmem [resolvable:$false] %s521_s28 }
  0x23   : > { %p517_p8 = scmp.ne.s32.totalorder %s162_s19, %s516_s26  ;;  %s523_s29 = scalar_lea.vmem %s522_s28, 256 }
  0x24   : > { %p524_p10 = scmp.lt.s32.totalorder %s162_s19, %s522_s28  ;;  %p525_p11 = scmp.lt.s32.totalorder %s523_s29, %s516_s26 }
  0x25   : > { %p519_p13 = pnand %p517_p8, %p477_p12 }
  0x26   : > { %p526_p1 = por %p525_p11, %p524_p10 }
  0x27   : > { %p520_p0 = pneg %p519_p13 }
  0x29   : > { %p527_p2 = pnand %p526_p1, %p520_p0 }
  0x2b   : > { %530 = shalt.err (!%p527_p2)
}
  0x2c   : > { %424 = dma.hbm_to_vmem [thread:$0]  (!%p666_p9), %s159_s17, 128, %s162_s19, %s150_s25  }
  0x2d   : > { %170 = sbr.rel (%p684_p6) target bundleno = 78 (0x4e), region = 28  ;;  %s172_s22 = sand.u32 (!%p684_p6), 1, %s569_s10  }
  0x2e   : > { %s403_s23 = sshll.u32 (!%p684_p6), %s172_s22, 3  ;;  %s173_s24 = scalar_lea.sflag (!%p684_p6), [#allocation3], %s172_s22 }
  0x2f   : > { %s176_s3 = scalar_lea.vmem (!%p684_p6), [#allocation2], %s403_s23 }
  0x32   : > { %556 = dma.done.wait (%p648_p7), %s173_s24, 128  }
  0x33   : > { %558 = vsyncadd (%p648_p7), %s173_s24, 4294967168  ;;  %s182_s4 = scalar_lea.sflag [#allocation5], %s172_s22  ;;  %s185_s5 = scalar_lea.vmem [#allocation4], %s403_s23 }
  0x34   : > { %560 = dma.done.wait (%p648_p7), %s182_s4, 128  }
  0x35   : > { %562 = vsyncadd (%p648_p7), %s182_s4, 4294967168  ;;  %p212_p9 = scmp.lt.s32.totalorder %s577_s12, 1  ;;  %v589_v0 = vmov 0.0   ;;  %v221_v1 = vld [vmem:[%s176_s3] sm:$0xff]  ;;  %v222_v2 = vld [vmem:[%s185_s5] sm:$0xff]  ;;  %vm283_vm12 = vcmask 1040384  }
  0x36   : > { %vm223_vm0 = vcmp.eq.s32.totalorder %v221_v1, 0  ;;  %vm224_vm1 = vcmp.eq.s32.totalorder %v222_v2, 0  ;;  %vm243_vm2 = vcmp.eq.s32.totalorder %v221_v1, 1  ;;  %vm244_vm3 = vcmp.eq.s32.totalorder %v222_v2, 1 }
  0x37   : > { %s751_s12 = smov (!%p212_p9, %s577_s12), 1  ;;  %vm225_vm4 = vmand %vm223_vm0, %vm224_vm1  ;;  %vm263_vm6 = vcmp.eq.s32.totalorder %v221_v1, 2  ;;  %vm264_vm7 = vcmp.eq.s32.totalorder %v222_v2, 2  ;;  %vm285_vm13 = vcmask 1041408   ;;  %vm287_vm14 = vcmask 1042432  }
  0x38   : > { %s405_s30 = sshll.u32 %s751_s12, 3  ;;  %vm226_vm5 = vmor %vm223_vm0, %vm224_vm1  ;;  %v406_v3 = vsel %vm225_vm4, 1.0, %v589_v0  ;;  %vm289_vm15 = vcmask 1043456   ;;  %vm291_vm0 = vcmask 1044480  }
  0x39   : > { %s713_s8 = scalar_lea.vmem %s738_s2, %s405_s30  ;;  %v229_v4 = vrot.slane %v406_v3, 4  ;;  %v407_v5 = vsel %vm226_vm5, 1.0, %v589_v0  ;;  %vm245_vm8 = vmand %vm243_vm2, %vm244_vm3 }
  0x3a   : > { %220 = vst [vmem:[%s713_s8] sm:$0x3f] %v589_v0  ;;  %v237_v6 = vrot.slane %v407_v5, 4  ;;  %vm246_vm9 = vmor %vm243_vm2, %vm244_vm3  ;;  %v408_v7 = vsel %vm245_vm8, 1.0, %v589_v0 }
  0x3b   : > { %v230_v8 = vadd.f32 %v406_v3, %v229_v4  ;;  %v249_v9 = vrot.slane %v408_v7, 4  ;;  %v409_v10 = vsel %vm246_vm9, 1.0, %v589_v0  ;;  %vm265_vm10 = vmand %vm263_vm6, %vm264_vm7 }
  0x3c   : > { %v238_v11 = vadd.f32 %v407_v5, %v237_v6  ;;  %v257_v12 = vrot.slane %v409_v10, 4  ;;  %vm266_vm11 = vmor %vm263_vm6, %vm264_vm7  ;;  %v410_v13 = vsel %vm265_vm10, 1.0, %v589_v0 }
  0x3d   : > { %v231_v14 = vrot.slane %v230_v8, 2  ;;  %v250_v15 = vadd.f32 %v408_v7, %v249_v9  ;;  %v269_v16 = vrot.slane %v410_v13, 4  ;;  %v411_v17 = vsel %vm266_vm11, 1.0, %v589_v0 }
  0x3e   : > { %v239_v18 = vrot.slane %v238_v11, 2  ;;  %v258_v19 = vadd.f32 %v409_v10, %v257_v12  ;;  %v277_v20 = vrot.slane %v411_v17, 4 }
  0x3f   : > { %v232_v21 = vadd.f32 %v231_v14, %v230_v8  ;;  %v251_v22 = vrot.slane %v250_v15, 2  ;;  %v270_v23 = vadd.f32 %v410_v13, %v269_v16 }
  0x40   : > { %v240_v24 = vadd.f32 %v239_v18, %v238_v11  ;;  %v259_v25 = vrot.slane %v258_v19, 2  ;;  %v278_v26 = vadd.f32 %v411_v17, %v277_v20 }
  0x41   : > { %v233_v27 = vrot.slane %v232_v21, 1  ;;  %v252_v28 = vadd.f32 %v251_v22, %v250_v15  ;;  %v271_v29 = vrot.slane %v270_v23, 2  ;;  %v293_v48 = vld [vmem:[%s713_s8] sm:$0x3f] }
  0x42   : > { %v241_v30 = vrot.slane %v240_v24, 1  ;;  %v260_v31 = vadd.f32 %v259_v25, %v258_v19  ;;  %v279_v32 = vrot.slane %v278_v26, 2 }
  0x43   : > { %v234_v33 = vadd.f32 %v233_v27, %v232_v21  ;;  %v253_v34 = vrot.slane %v252_v28, 1  ;;  %v272_v35 = vadd.f32 %v271_v29, %v270_v23 }
  0x44   : > { %v242_v36 = vadd.f32 %v241_v30, %v240_v24  ;;  %v261_v37 = vrot.slane %v260_v31, 1  ;;  %v280_v38 = vadd.f32 %v279_v32, %v278_v26 }
  0x45   : > { %v254_v39 = vadd.f32 %v253_v34, %v252_v28  ;;  %v273_v40 = vrot.slane %v272_v35, 1 }
  0x46   : > { %v262_v41 = vadd.f32 %v261_v37, %v260_v31  ;;  %v281_v42 = vrot.slane %v280_v38, 1  ;;  %v284_v43 = vsel %vm283_vm12, %v234_v33, %v242_v36 }
  0x47   : > { %v274_v44 = vadd.f32 %v273_v40, %v272_v35  ;;  %v286_v45 = vsel %vm285_vm13, %v284_v43, %v254_v39 }
  0x48   : > { %v282_v46 = vadd.f32 %v281_v42, %v280_v38  ;;  %v288_v47 = vsel %vm287_vm14, %v286_v45, %v262_v41 }
  0x49   : > { %v290_v49 = vsel %vm289_vm15, %v288_v47, %v274_v44 }
  0x4a   : > { %v292_v50 = vsel %vm291_vm0, %v290_v49, %v282_v46 }
  0x4b   : > { %v294_v51 = vadd.f32 %v293_v48, %v292_v50 }
  0x4d   : > { %295 = vst [vmem:[%s713_s8] sm:$0x3f] %v294_v51 }
  0x4e PF: > { %s18_s14 = sadd.s32 1, %s585_s14   ;;  %s743_s9 = smov %s569_s10 }
  0x4f   : > { %p15_p7 = scmp.ge.s32.totalorder %s18_s14, 4   ;;  %s744_s10 = smov %s573_s11 }
  0x50   : > { %s745_s11 = smov %s654_s21  ;;  %s746_s12 = smov %s581_s13 }
  0x51   : > { %s747_s13 = smov %s749_s16  ;;  %17 = sbr.rel (!%p15_p7) target bundleno = 6 (0x6), region = 85 }
  0x56   :  { %315 = vsyncpa [#allocation3], 1 }
  0x57   :  { %317 = vsyncpa [#allocation3 + $0x1], 1 }
  0x58   :  { %318 = vsyncpa [#allocation5], 1 }
  0x59   :  { %320 = vsyncpa [#allocation5 + $0x1], 1 }

</bundles_post_ra>
